<compile_context>
chip_gen: v5e
topology: v5e:2x2
jax: 0.10.0
libtpu: 0.0.40
codegen_flags: <defaults>
</compile_context>

<pallas_src>
import functools

import jax
import jax.numpy as jnp
from jax.experimental import pallas as pl
from jax.experimental.pallas import tpu as pltpu


def _round_up(n, m):
    return ((n + m - 1) // m) * m


def _ffn_kernel(x_ref, w1_ref, b1_ref, w2_ref, b2_ref, o_ref):
    # First linear: (tm, idim_p) @ (idim_p, hidden_p), f32 accumulate on MXU.
    h = jnp.dot(x_ref[...], w1_ref[...], preferred_element_type=jnp.float32)
    h = h + b1_ref[...]                 # bias broadcast once per tile (f32)
    h = jnp.maximum(h, 0.0)             # ReLU in f32 (no bf16 VPU on v5e)
    # Dropout: identity at inference time.
    h = h.astype(w2_ref.dtype)          # downcast once for the second MXU pass
    # Second linear: (tm, hidden_p) @ (hidden_p, idim_p), f32 accumulate.
    y = jnp.dot(h, w2_ref[...], preferred_element_type=jnp.float32)
    y = y + b2_ref[...]
    o_ref[...] = y.astype(o_ref.dtype)  # lane-dense (idim_p % 128 == 0) store


@functools.partial(jax.jit, static_argnames=("block_rows", "compute_dtype"))
def positionwise_feed_forward(x, w1, b1, w2, b2, *,
                              block_rows=256,
                              compute_dtype=jnp.bfloat16):
    """x: (B, T, idim); w1: (idim, hidden); b1: (hidden,);
    w2: (hidden, idim); b2: (idim,).  Weights are in (in, out) layout."""
    B, T, idim = x.shape
    hidden = w1.shape[1]
    rows = B * T

    # Lane-dense padding of the feature axes (multiples of 128).
    idim_p = _round_up(idim, 128)
    hidden_p = _round_up(hidden, 128)

    # M tile: as large as requested, but never bigger than the (8-aligned)
    # row count.  Rows are padded to a tile multiple -> no divisibility assert.
    tm = min(block_rows, _round_up(rows, 8))
    rows_p = _round_up(rows, tm)

    x2d = x.reshape(rows, idim)
    x2d = jnp.pad(x2d, ((0, rows_p - rows), (0, idim_p - idim)))
    x2d = x2d.astype(compute_dtype)
    w1_p = jnp.pad(w1, ((0, idim_p - idim), (0, hidden_p - hidden))).astype(compute_dtype)
    w2_p = jnp.pad(w2, ((0, hidden_p - hidden), (0, idim_p - idim))).astype(compute_dtype)
    b1_p = jnp.pad(b1, (0, hidden_p - hidden)).astype(jnp.float32).reshape(1, hidden_p)
    b2_p = jnp.pad(b2, (0, idim_p - idim)).astype(jnp.float32).reshape(1, idim_p)

    grid = (rows_p // tm,)

    # Advisory cost estimate for the XLA scheduler.
    flops = 4 * rows_p * idim_p * hidden_p  # two matmuls, 2*M*N*K each
    bytes_accessed = (
        x2d.size * x2d.dtype.itemsize                 # read x
        + rows_p * idim_p * x.dtype.itemsize          # write out
        + w1_p.size * w1_p.dtype.itemsize
        + w2_p.size * w2_p.dtype.itemsize
        + b1_p.size * 4 + b2_p.size * 4
    )
    cost = pl.CostEstimate(flops=flops, transcendentals=0,
                           bytes_accessed=bytes_accessed)

    out2d = pl.pallas_call(
        _ffn_kernel,
        out_shape=jax.ShapeDtypeStruct((rows_p, idim_p), x.dtype),
        grid_spec=pltpu.PrefetchScalarGridSpec(
            num_scalar_prefetch=0,
            grid=grid,
            in_specs=[
                pl.BlockSpec((tm, idim_p), lambda i: (i, 0)),          # x tile
                pl.BlockSpec((idim_p, hidden_p), lambda i: (0, 0)),    # W1 (resident)
                pl.BlockSpec((1, hidden_p), lambda i: (0, 0)),         # b1
                pl.BlockSpec((hidden_p, idim_p), lambda i: (0, 0)),    # W2 (resident)
                pl.BlockSpec((1, idim_p), lambda i: (0, 0)),           # b2
            ],
            out_specs=pl.BlockSpec((tm, idim_p), lambda i: (i, 0)),
        ),
        compiler_params=pltpu.CompilerParams(
            dimension_semantics=("parallel",),          # row axis -> megacore
            vmem_limit_bytes=64 * 1024 * 1024,
        ),
        cost_estimate=cost,
    )(x2d, w1_p, b1_p, w2_p, b2_p)

    # Strip row / lane padding and restore (B, T, idim).
    return out2d[:rows, :idim].reshape(B, T, idim)


def _init_linear_params(key, in_dim, out_dim, dtype=jnp.float32):
    """Deterministic init mimicking torch.nn.Linear (uniform +/- 1/sqrt(in))."""
    kw, kb = jax.random.split(key)
    bound = 1.0 / jnp.sqrt(jnp.array(in_dim, dtype=jnp.float32))
    # Stored directly in (in, out) layout for the kernel.
    w = jax.random.uniform(kw, (in_dim, out_dim), dtype, -bound, bound)
    b = jax.random.uniform(kb, (out_dim,), dtype, -bound, bound)
    return w, b


if __name__ == "__main__":
    # Small shapes consistent with the module: batch=2, seq=16, idim=32, hidden=128.
    B, T, idim, hidden = 2, 16, 32, 128
    dropout_rate = 0.1  # inference-mode identity

    key = jax.random.PRNGKey(0)
    kx, k1, k2 = jax.random.split(key, 3)

    x = jax.random.normal(kx, (B, T, idim), dtype=jnp.float32)
    w1, b1 = _init_linear_params(k1, idim, hidden)
    w2, b2 = _init_linear_params(k2, hidden, idim)

    # Reference in plain JAX (eval-mode dropout = identity), f32.
    ref = jnp.maximum(x @ w1 + b1, 0.0) @ w2 + b2

    # 1) f32 compute path: bit-accurate check.
    out_f32 = positionwise_feed_forward(x, w1, b1, w2, b2,
                                        compute_dtype=jnp.float32)
    out_f32 = jax.block_until_ready(out_f32)
    assert out_f32.shape == (B, T, idim)
    assert jnp.allclose(out_f32, ref, atol=1e-5, rtol=1e-5)

    # 2) Default bf16 compute path (MXU-fast): loosened tolerance for bf16
    #    input/weight rounding (accumulation stays f32).
    out_bf16 = positionwise_feed_forward(x, w1, b1, w2, b2)
    out_bf16 = jax.block_until_ready(out_bf16)
    assert out_bf16.shape == (B, T, idim)
    assert jnp.allclose(out_bf16, ref, atol=5e-2, rtol=5e-2)

    print("KERNEL_OK")
</pallas_src>

<mosaic_0001>
module attributes {stable_mosaic.version = 11 : i64} {
  func.func @_ffn_kernel(%arg0: i32, %arg1: memref<32x128xf32, #tpu.memory_space<vmem>>, %arg2: memref<128x128xf32, #tpu.memory_space<vmem>>, %arg3: memref<1x128xf32, #tpu.memory_space<vmem>>, %arg4: memref<128x128xf32, #tpu.memory_space<vmem>>, %arg5: memref<1x128xf32, #tpu.memory_space<vmem>>, %arg6: memref<32x128xf32, #tpu.memory_space<vmem>>) attributes {dimension_semantics = [#tpu.dimension_semantics<parallel>], iteration_bounds = array<i64: 1>, scalar_prefetch = 0 : i64, scratch_operands = 0 : i64, tpu.core_type = #tpu.core_type<tc>, window_params = [{transform_indices = @transform_0, window_bounds = array<i64: 32, 128>}, {pipeline_mode = #tpu.pipeline_mode<synchronous>, transform_indices = @transform_1, window_bounds = array<i64: 128, 128>}, {pipeline_mode = #tpu.pipeline_mode<synchronous>, transform_indices = @transform_2, window_bounds = array<i64: 1, 128>}, {pipeline_mode = #tpu.pipeline_mode<synchronous>, transform_indices = @transform_3, window_bounds = array<i64: 128, 128>}, {pipeline_mode = #tpu.pipeline_mode<synchronous>, transform_indices = @transform_4, window_bounds = array<i64: 1, 128>}, {transform_indices = @transform_5, window_bounds = array<i64: 32, 128>}]} {
    %c0 = arith.constant 0 : index
    %c0_0 = arith.constant 0 : index
    %0 = vector.load %arg1[%c0, %c0_0] : memref<32x128xf32, #tpu.memory_space<vmem>>, vector<32x128xf32>
    %c0_1 = arith.constant 0 : index
    %c0_2 = arith.constant 0 : index
    %1 = vector.load %arg2[%c0_1, %c0_2] : memref<128x128xf32, #tpu.memory_space<vmem>>, vector<128x128xf32>
    %cst = arith.constant dense<0.000000e+00> : vector<32x128xf32>
    %2 = tpu.matmul %0, %1, %cst {dimension_numbers = #tpu.dot_dimension_numbers<[1], [0], [0], [1], [0, 0, 1, 1], [], []>} : vector<32x128xf32>, vector<128x128xf32>, vector<32x128xf32> -> vector<32x128xf32>
    %c0_3 = arith.constant 0 : index
    %c0_4 = arith.constant 0 : index
    %3 = vector.load %arg3[%c0_3, %c0_4] : memref<1x128xf32, #tpu.memory_space<vmem>>, vector<1x128xf32>
    %4 = vector.broadcast %3 : vector<1x128xf32> to vector<32x128xf32>
    %5 = arith.addf %2, %4 : vector<32x128xf32>
    %cst_5 = arith.constant 0.000000e+00 : f32
    %6 = vector.broadcast %cst_5 : f32 to vector<32x128xf32>
    %7 = arith.maximumf %5, %6 : vector<32x128xf32>
    %c0_6 = arith.constant 0 : index
    %c0_7 = arith.constant 0 : index
    %8 = vector.load %arg4[%c0_6, %c0_7] : memref<128x128xf32, #tpu.memory_space<vmem>>, vector<128x128xf32>
    %cst_8 = arith.constant dense<0.000000e+00> : vector<32x128xf32>
    %9 = tpu.matmul %7, %8, %cst_8 {dimension_numbers = #tpu.dot_dimension_numbers<[1], [0], [0], [1], [0, 0, 1, 1], [], []>} : vector<32x128xf32>, vector<128x128xf32>, vector<32x128xf32> -> vector<32x128xf32>
    %c0_9 = arith.constant 0 : index
    %c0_10 = arith.constant 0 : index
    %10 = vector.load %arg5[%c0_9, %c0_10] : memref<1x128xf32, #tpu.memory_space<vmem>>, vector<1x128xf32>
    %11 = vector.broadcast %10 : vector<1x128xf32> to vector<32x128xf32>
    %12 = arith.addf %9, %11 : vector<32x128xf32>
    %c0_11 = arith.constant 0 : index
    %c0_12 = arith.constant 0 : index
    %13 = vector.load %arg6[%c0_11, %c0_12] : memref<32x128xf32, #tpu.memory_space<vmem>>, vector<32x128xf32>
    tpu.vector_store %arg6[%c0_11, %c0_12], %12 {strides = array<i32>} : memref<32x128xf32, #tpu.memory_space<vmem>>, vector<32x128xf32>,
    return
  }
  func.func @transform_0(%arg0: i32) -> (i32, i32) {
    %c0_i32 = arith.constant 0 : i32
    %c0_i32_0 = arith.constant 0 : i32
    return %arg0, %c0_i32 : i32, i32
  }
  func.func @transform_1(%arg0: i32) -> (i32, i32) {
    %c0_i32 = arith.constant 0 : i32
    %c0_i32_0 = arith.constant 0 : i32
    %c0_i32_1 = arith.constant 0 : i32
    return %c0_i32, %c0_i32_0 : i32, i32
  }
  func.func @transform_2(%arg0: i32) -> (i32, i32) {
    %c0_i32 = arith.constant 0 : i32
    %c0_i32_0 = arith.constant 0 : i32
    %c0_i32_1 = arith.constant 0 : i32
    return %c0_i32, %c0_i32_0 : i32, i32
  }
  func.func @transform_3(%arg0: i32) -> (i32, i32) {
    %c0_i32 = arith.constant 0 : i32
    %c0_i32_0 = arith.constant 0 : i32
    %c0_i32_1 = arith.constant 0 : i32
    return %c0_i32, %c0_i32_0 : i32, i32
  }
  func.func @transform_4(%arg0: i32) -> (i32, i32) {
    %c0_i32 = arith.constant 0 : i32
    %c0_i32_0 = arith.constant 0 : i32
    %c0_i32_1 = arith.constant 0 : i32
    return %c0_i32, %c0_i32_0 : i32, i32
  }
  func.func @transform_5(%arg0: i32) -> (i32, i32) {
    %c0_i32 = arith.constant 0 : i32
    %c0_i32_0 = arith.constant 0 : i32
    return %arg0, %c0_i32 : i32, i32
  }
}

</mosaic_0001>

<bundles_post_ra>
// kernel: positionwise_feed_forward.1
= control target key start
LH: loop header
LB: loop body
LE: loop exit
PB: predicated region body
PF: predicated region fallthrough
CT: control target
= control target key end

     0   :  { %s362_s0 = inlined_call_operand.vmem [shape: f32[32,128], index: 0, kind: input, shape index: {}]   ;;  %s363_s1 = inlined_call_operand.vmem [shape: f32[128,128], index: 1, kind: input, shape index: {}]   ;;  %s364_s2 = inlined_call_operand.vmem [shape: f32[1,128], index: 2, kind: input, shape index: {}]   ;;  %s365_s3 = inlined_call_operand.vmem [shape: f32[128,128], index: 3, kind: input, shape index: {}]   ;;  %s366_s4 = inlined_call_operand.vmem [shape: f32[1,128], index: 4, kind: input, shape index: {}]   ;;  %s367_s5 = inlined_call_operand.hbm [shape: f32[32,128], index: 5, kind: output, shape index: {}]  }
   0x1   :  { %v40_v0 = vld [vmem:[%s363_s1 + $0x78] sm:$0xff]  ;;  %v39_v1 = vld [vmem:[%s363_s1 + $0x70] sm:$0xff]  ;;  %v38_v2 = vld [vmem:[%s363_s1 + $0x68] sm:$0xff] }
   0x2   :  { %149 = vmatpush.msra.mxu2 %v40_v0  ;;  %45 = vmatpush.msra.mxu0 %v40_v0  ;;  %v37_v3 = vld [vmem:[%s363_s1 + $0x60] sm:$0xff]  ;;  %v36_v4 = vld [vmem:[%s363_s1 + $0x58] sm:$0xff] }
   0x4   :  { %150 = vmatpush.msra.mxu2 %v39_v1  ;;  %46 = vmatpush.msra.mxu0 %v39_v1 }
   0x6   :  { %151 = vmatpush.msra.mxu2 %v38_v2  ;;  %47 = vmatpush.msra.mxu0 %v38_v2 }
   0x7   :  { %10 = vsyncpa [#allocation3], 0  ;;  %v35_v5 = vld [vmem:[%s363_s1 + $0x50] sm:$0xff]  ;;  %v93_v6 = vld [vmem:[%s365_s3 + $0x78] sm:$0xff]  ;;  %s137_s19 = sshll.u32 %s367_s5, 4  ;;  %s214_s20 = smov 8   ;;  %s138_s19 = int_to_ptr.hbm [resolvable:$true] %s137_s19 }
   0x8   :  { %152 = vmatpush.msra.mxu2 %v37_v3  ;;  %48 = vmatpush.msra.mxu0 %v37_v3  ;;  %v92_v7 = vld [vmem:[%s365_s3 + $0x70] sm:$0xff]  ;;  %v34_v8 = vld [vmem:[%s363_s1 + $0x48] sm:$0xff]  ;;  %v33_v10 = vld [vmem:[%s363_s1 + $0x40] sm:$0xff] }
   0x9   :  { %165 = vmatpush.msra.mxu3 %v93_v6  ;;  %98 = vmatpush.msra.mxu1 %v93_v6  ;;  %v91_v9 = vld [vmem:[%s365_s3 + $0x68] sm:$0xff]  ;;  %v90_v11 = vld [vmem:[%s365_s3 + $0x60] sm:$0xff]  ;;  %v32_v12 = vld [vmem:[%s363_s1 + $0x38] sm:$0xff] }
   0xa   :  { %153 = vmatpush.msra.mxu2 %v36_v4  ;;  %49 = vmatpush.msra.mxu0 %v36_v4  ;;  %v89_v13 = vld [vmem:[%s365_s3 + $0x58] sm:$0xff]  ;;  %v31_v14 = vld [vmem:[%s363_s1 + $0x30] sm:$0xff]  ;;  %v30_v16 = vld [vmem:[%s363_s1 + $0x28] sm:$0xff] }
   0xb   :  { %166 = vmatpush.msra.mxu3 %v92_v7  ;;  %99 = vmatpush.msra.mxu1 %v92_v7  ;;  %v88_v15 = vld [vmem:[%s365_s3 + $0x50] sm:$0xff]  ;;  %v87_v17 = vld [vmem:[%s365_s3 + $0x48] sm:$0xff]  ;;  %v29_v18 = vld [vmem:[%s363_s1 + $0x20] sm:$0xff] }
   0xc   :  { %154 = vmatpush.msra.mxu2 %v35_v5  ;;  %50 = vmatpush.msra.mxu0 %v35_v5  ;;  %v86_v19 = vld [vmem:[%s365_s3 + $0x40] sm:$0xff]  ;;  %v28_v20 = vld [vmem:[%s363_s1 + $0x18] sm:$0xff]  ;;  %v27_v22 = vld [vmem:[%s363_s1 + $0x10] sm:$0xff] }
   0xd   :  { %167 = vmatpush.msra.mxu3 %v91_v9  ;;  %100 = vmatpush.msra.mxu1 %v91_v9  ;;  %v85_v21 = vld [vmem:[%s365_s3 + $0x38] sm:$0xff]  ;;  %v84_v23 = vld [vmem:[%s365_s3 + $0x30] sm:$0xff]  ;;  %v26_v24 = vld [vmem:[%s363_s1 + $0x8] sm:$0xff] }
   0xe   :  { %155 = vmatpush.msra.mxu2 %v34_v8  ;;  %51 = vmatpush.msra.mxu0 %v34_v8  ;;  %v83_v25 = vld [vmem:[%s365_s3 + $0x28] sm:$0xff]  ;;  %v25_v26 = vld [vmem:[%s363_s1] sm:$0xff]  ;;  %v23_v27 = vld [vmem:[%s362_s0 + $0x10] sm:$0xff] }
   0xf   :  { %168 = vmatpush.msra.mxu3 %v90_v11  ;;  %101 = vmatpush.msra.mxu1 %v90_v11  ;;  %v21_v28 = vld [vmem:[%s362_s0] sm:$0xff]  ;;  %v81_v30 = vld [vmem:[%s365_s3 + $0x18] sm:$0xff]  ;;  %v22_v32 = vld [vmem:[%s362_s0 + $0x8] sm:$0xff] }
  0x10   :  { %156 = vmatpush.msra.mxu2 %v33_v10  ;;  %52 = vmatpush.msra.mxu0 %v33_v10  ;;  %v82_v29 = vld [vmem:[%s365_s3 + $0x20] sm:$0xff]  ;;  %v24_v31 = vld [vmem:[%s362_s0 + $0x18] sm:$0xff]  ;;  %v80_v33 = vld [vmem:[%s365_s3 + $0x10] sm:$0xff] }
  0x11   :  { %169 = vmatpush.msra.mxu3 %v89_v13  ;;  %102 = vmatpush.msra.mxu1 %v89_v13  ;;  %v79_v34 = vld [vmem:[%s365_s3 + $0x8] sm:$0xff]  ;;  %v78_v35 = vld [vmem:[%s365_s3] sm:$0xff] }
  0x12   :  { %157 = vmatpush.msra.mxu2 %v32_v12  ;;  %53 = vmatpush.msra.mxu0 %v32_v12  ;;  %v184_v36 = vld [vmem:[%s364_s2] ss:$0 sm:$0xff]  ;;  %s212_s2 = smov [#allocation2]  }
  0x13   :  { %170 = vmatpush.msra.mxu3 %v88_v15  ;;  %103 = vmatpush.msra.mxu1 %v88_v15  ;;  %v185_v49 = vld [vmem:[%s366_s4] ss:$0 sm:$0xff]  ;;  %s135_s16 = sshll.u32 %s212_s2, 4  ;;  %s213_s4 = smov 128   ;;  %s136_s16 = int_to_ptr.vmem [resolvable:$true] %s135_s16 }
  0x14   :  { %158 = vmatpush.msra.mxu2 %v31_v14  ;;  %54 = vmatpush.msra.mxu0 %v31_v14 }
  0x15   :  { %171 = vmatpush.msra.mxu3 %v87_v17  ;;  %104 = vmatpush.msra.mxu1 %v87_v17 }
  0x16   :  { %159 = vmatpush.msra.mxu2 %v30_v16  ;;  %55 = vmatpush.msra.mxu0 %v30_v16 }
  0x17   :  { %172 = vmatpush.msra.mxu3 %v86_v19  ;;  %105 = vmatpush.msra.mxu1 %v86_v19 }
  0x18   :  { %160 = vmatpush.msra.mxu2 %v29_v18  ;;  %56 = vmatpush.msra.mxu0 %v29_v18 }
  0x19   :  { %173 = vmatpush.msra.mxu3 %v85_v21  ;;  %106 = vmatpush.msra.mxu1 %v85_v21 }
  0x1a   :  { %161 = vmatpush.msra.mxu2 %v28_v20  ;;  %57 = vmatpush.msra.mxu0 %v28_v20 }
  0x1b   :  { %174 = vmatpush.msra.mxu3 %v84_v23  ;;  %107 = vmatpush.msra.mxu1 %v84_v23 }
  0x1c   :  { %162 = vmatpush.msra.mxu2 %v27_v22  ;;  %58 = vmatpush.msra.mxu0 %v27_v22 }
  0x1d   :  { %175 = vmatpush.msra.mxu3 %v83_v25  ;;  %108 = vmatpush.msra.mxu1 %v83_v25 }
  0x1e   :  { %163 = vmatpush.msra.mxu2 %v26_v24  ;;  %59 = vmatpush.msra.mxu0 %v26_v24 }
  0x1f   :  { %176 = vmatpush.msra.mxu3 %v82_v29  ;;  %109 = vmatpush.msra.mxu1 %v82_v29 }
  0x20   :  { %164 = vmatpush.msra.mxu2 %v25_v26  ;;  %60 = vmatpush.msra.mxu0 %v25_v26 }
  0x21   :  { %67 = vmatmul.f32.vlgmr.msra.gmra.mxu2 %v23_v27  ;;  %61 = vmatmul.f32.vlgmr.msra.gmra.mxu0 %v21_v28 }
  0x22   :  { %177 = vmatpush.msra.mxu3 %v81_v30  ;;  %110 = vmatpush.msra.mxu1 %v81_v30 }
  0x24   :  { %178 = vmatpush.msra.mxu3 %v80_v33  ;;  %111 = vmatpush.msra.mxu1 %v80_v33 }
  0x26   :  { %179 = vmatpush.msra.mxu3 %v79_v34  ;;  %112 = vmatpush.msra.mxu1 %v79_v34 }
  0x28   :  { %180 = vmatpush.msra.mxu3 %v78_v35  ;;  %113 = vmatpush.msra.mxu1 %v78_v35 }
  0x29   :  { %70 = vmatmul.f32.gmra.mxu2 %v24_v31  ;;  %64 = vmatmul.f32.gmra.mxu0 %v22_v32 }
  0x9e   :  { %v62_v37 = vpop.f32.mrf.mxu0 }
  0x9f   :  { %v63_v38 = vadd.f32 %v184_v36, %v62_v37 }
  0xa1   :  { %v74_v39 = vmax.f32 %v63_v38, 0.0 }
  0xa3   :  { %114 = vmatmul.f32.vlgmr.msra.gmra.mxu1 %v74_v39 }
  0xa4   :  { %v68_v40 = vpop.f32.mrf.mxu2 }
  0xa5   :  { %v69_v41 = vadd.f32 %v184_v36, %v68_v40 }
  0xa6   :  { %v65_v42 = vpop.f32.mrf.mxu0 }
  0xa7   :  { %v76_v43 = vmax.f32 %v69_v41, 0.0  ;;  %v66_v44 = vadd.f32 %v184_v36, %v65_v42 }
  0xa9   :  { %120 = vmatmul.f32.vlgmr.msra.gmra.mxu3 %v76_v43  ;;  %v75_v45 = vmax.f32 %v66_v44, 0.0 }
  0xab   :  { %117 = vmatmul.f32.gmra.mxu1 %v75_v45 }
  0xac   :  { %v71_v46 = vpop.f32.mrf.mxu2 }
  0xad   :  { %v72_v47 = vadd.f32 %v184_v36, %v71_v46 }
  0xaf   :  { %v77_v48 = vmax.f32 %v72_v47, 0.0 }
  0xb1   :  { %123 = vmatmul.f32.gmra.mxu3 %v77_v48 }
 0x120   :  { %v115_v50 = vpop.f32.mrf.mxu1 }
 0x121   :  { %v116_v51 = vadd.f32 %v185_v49, %v115_v50 }
 0x123   :  { %127 = vst [vmem:[#allocation2] sm:$0xff] %v116_v51 }
 0x128   :  { %v118_v52 = vpop.f32.mrf.mxu1 }
 0x129   :  { %v119_v53 = vadd.f32 %v185_v49, %v118_v52 }
 0x12b   :  { %128 = vst [vmem:[#allocation2 + $0x8] sm:$0xff] %v119_v53 }
 0x12c   :  { %v121_v54 = vpop.f32.mrf.mxu3 }
 0x12d   :  { %v122_v55 = vadd.f32 %v185_v49, %v121_v54 }
 0x12f   :  { %129 = vst [vmem:[#allocation2 + $0x10] sm:$0xff] %v122_v55 }
 0x134   :  { %v124_v56 = vpop.f32.mrf.mxu3 }
 0x135   :  { %v125_v57 = vadd.f32 %v185_v49, %v124_v56 }
 0x137   :  { %130 = vst [vmem:[#allocation2 + $0x18] sm:$0xff] %v125_v57 }
 0x138   :  { %143 = dma.vmem_to_hbm [thread:$0]  %s136_s16, 512, %s138_s19, [#allocation3], %s213_s4, %s213_s4, %s214_s20  }
 0x139   :  { %210 = dma.done.wait [#allocation3], 512  }
 0x13a   :  { %211 = vsyncadd [#allocation3], 4294966784 }
 0x13b   :  { %148 = vsyncpa [#allocation3], 1 }

</bundles_post_ra>
